<compile_context>
chip_gen: v5e
topology: v5e:2x2
jax: 0.10.0
libtpu: 0.0.40
codegen_flags: <defaults>
</compile_context>

<pallas_src>
from functools import partial

import jax
import jax.numpy as jnp
from jax import lax
from jax.experimental import pallas as pl
from jax.experimental.pallas import tpu as pltpu


# ----------------------------- small helpers --------------------------------

def _pair(v):
    if isinstance(v, (list, tuple)):
        return int(v[0]), int(v[1])
    return int(v), int(v)


def _round_up(x, m):
    return ((x + m - 1) // m) * m


def _vmem_block_bytes(lead, sublane, lane, itemsize):
    """VMEM footprint of a (lead, sublane, lane) block incl. (8,128) tile padding."""
    sub_tile = {4: 8, 2: 16, 1: 32}.get(itemsize, 8)
    return (lead * _round_up(max(sublane, 1), sub_tile)
            * _round_up(max(lane, 1), 128) * itemsize)


def _vmem_limit_bytes():
    """Generation-aware scoped-VMEM limit: v7x (64 MiB) -> 48 MiB, v5e/v6e -> 96 MiB."""
    cap = 128 * 1024 * 1024
    try:
        cap = int(pltpu.get_tpu_info().vmem_capacity_bytes)
    except Exception:
        pass
    return int(min((cap * 3) // 4, 96 * 1024 * 1024))


def _choose_h_tiles(h_out, w1, tc, out_isize, steps_nc, rem_budget, min_steps=8):
    """Number of H tiles (divisor of h_out) fitting rem_budget, aiming for >=min_steps
    total grid steps while keeping the per-step tile reasonably large."""
    divs = [d for d in range(1, h_out + 1) if h_out % d == 0]
    fitting = []
    for d in divs:
        th = h_out // d
        need = 2 * _vmem_block_bytes(th, w1, tc, out_isize)   # double-buffered output
        need += _vmem_block_bytes(th, w1, tc, 4)              # f32 accumulator / spill
        if need <= rem_budget:
            fitting.append(d)
    if not fitting:
        return None
    min_th = min(h_out, 4)
    ok = [d for d in fitting if (h_out // d) >= min_th]
    for d in ok:
        if steps_nc * d >= min_steps:
            return d
    if ok:
        return ok[-1]          # most steps while keeping a reasonable tile
    return fitting[0]


def _select_tiling(n, c_out, hp, wp, h_out, w1, in_isize, out_isize, vmem_limit):
    """Pick (channel tile, #H tiles) so double-buffered blocks + acc fit scoped VMEM."""
    slack = vmem_limit - (6 << 20)            # headroom for weights/bias/compiler scratch
    if c_out % 128 == 0:                      # lane dim must be 128-multiple or full
        c_cands = [c for c in range(c_out, 0, -128) if c_out % c == 0]
    else:
        c_cands = [c_out]
    for tc in c_cands:
        in_blk = 2 * _vmem_block_bytes(hp, wp, tc, in_isize)   # double-buffered input
        rem = slack - in_blk
        if rem <= 0:
            continue
        steps_nc = n * (c_out // tc)
        n_h = _choose_h_tiles(h_out, w1, tc, out_isize, steps_nc, rem)
        if n_h is not None:
            return tc, n_h
    return None, None


# ------------------------------- the kernel ----------------------------------

def _dw_bn_leaky_kernel(x_ref, w_ref, b_ref, o_ref, *, kh, kw, sh, leaky_slope):
    """x_ref: (Hp, Wp, TC)    zero-padded NHWC input (channels on lanes), resident
                              across the innermost H grid axis
       w_ref: (kh*kw, TC)     BN-folded depthwise taps, f32
       b_ref: (1, TC)         BN-folded per-channel bias, f32
       o_ref: (TH, W1, TC)    output rows tile (W1 = stride-1 output width)
    """
    th, w1, tc = o_ref.shape
    row0 = pl.program_id(2) * (th * sh)            # first input row for this H tile
    h_ext = sh * (th - 1) + 1                      # input-row extent covered per tap

    wts = w_ref[...].astype(jnp.float32)           # (kh*kw, TC)
    bias = b_ref[...][0].astype(jnp.float32)       # (TC,)

    # accumulator lives in vregs, seeded with the folded BN bias
    acc = jnp.broadcast_to(bias[None, None, :], (th, w1, tc))

    for di in range(kh):                           # taps fully unrolled at trace time
        for dj in range(kw):
            tap = x_ref[pl.ds(row0 + di, h_ext), pl.ds(dj, w1), :]
            if sh > 1:
                tap = tap[::sh]                    # leading-dim (H) stride
            coef = wts[di * kw + dj][None, None, :]
            acc = acc + tap.astype(jnp.float32) * coef

    y = jnp.where(acc >= 0.0, acc, acc * leaky_slope)   # LeakyReLU
    o_ref[...] = y.astype(o_ref.dtype)


# ------------------------------- wrapper --------------------------------------

def _reference_forward(x, conv_weight, gamma, beta, mean, var,
                       *, kernel_size, stride, leaky_slope=0.1, eps=1e-5):
    """Pure-XLA reference / fallback path (depthwise conv + BN(eval) + LeakyReLU)."""
    kh, kw = _pair(kernel_size)
    sh, sw = _pair(stride)
    ph, pw = kh // 2, kw // 2
    y = lax.conv_general_dilated(
        x.astype(jnp.float32), conv_weight.astype(jnp.float32),
        window_strides=(sh, sw), padding=((ph, ph), (pw, pw)),
        dimension_numbers=("NCHW", "OIHW", "NCHW"),
        feature_group_count=x.shape[1],
        precision=lax.Precision.HIGHEST)
    scale = gamma.astype(jnp.float32) * lax.rsqrt(var.astype(jnp.float32) + eps)
    shift = beta.astype(jnp.float32) - mean.astype(jnp.float32) * scale
    y = y * scale[None, :, None, None] + shift[None, :, None, None]
    return jnp.where(y > 0, y, leaky_slope * y).astype(x.dtype)


@partial(jax.jit, static_argnames=("kernel_size", "stride", "leaky_slope", "eps"))
def conv2d_dw_batch_leaky(x, conv_weight, bn_gamma, bn_beta, bn_mean, bn_var,
                          *, kernel_size, stride, leaky_slope=0.1, eps=1e-5):
    """Forward of Conv2dDWBatchLeaky (inference): depthwise conv + BN(eval) + LeakyReLU."""
    N, c_in, H, W = x.shape
    c_out = conv_weight.shape[0]
    assert c_out % c_in == 0, "depthwise conv needs out_channels % in_channels == 0"
    mult = c_out // c_in

    kh, kw = _pair(kernel_size)
    sh, sw = _pair(stride)
    ph, pw = kh // 2, kw // 2

    hp, wp = H + 2 * ph, W + 2 * pw
    h_out = (hp - kh) // sh + 1                    # strided output height
    w1 = wp - kw + 1                               # stride-1 width computed by the kernel
    # final strided width is recovered by the host-side subsample (fused w/ transpose)

    vmem_limit = _vmem_limit_bytes()
    tc, n_h = _select_tiling(N, c_out, hp, wp, h_out, w1,
                             x.dtype.itemsize, x.dtype.itemsize, vmem_limit)
    if tc is None:
        # TODO(synk): halo-tiled (H/W) input blocks for huge planes with few channels;
        # fall back to the XLA depthwise conv rather than overflow VMEM.
        return _reference_forward(x, conv_weight, bn_gamma, bn_beta, bn_mean, bn_var,
                                  kernel_size=kernel_size, stride=stride,
                                  leaky_slope=leaky_slope, eps=eps)
    th = h_out // n_h

    # ---- fold BatchNorm (eval mode) into the depthwise taps + per-channel bias ----
    # TODO(synk): training-mode BatchNorm (batch statistics + running-stat update) is
    # not implemented; eval-mode running stats are folded into scale/bias.
    scale = bn_gamma.astype(jnp.float32) * lax.rsqrt(bn_var.astype(jnp.float32) + eps)
    bias = bn_beta.astype(jnp.float32) - bn_mean.astype(jnp.float32) * scale
    w_taps = (conv_weight.astype(jnp.float32).reshape(c_out, kh * kw)
              * scale[:, None]).T                 # (kh*kw, c_out): channels on lanes
    b_vec = bias.reshape(1, c_out)

    if mult > 1:
        # TODO(synk): fold the channel multiplier into the x BlockSpec index_map
        # instead of materialising the repeat in HBM.
        x = jnp.repeat(x, mult, axis=1)

    # NCHW -> NHWC relayout (channels -> lanes) with the zero-pad fused into the
    # same XLA copy; the kernel then reads the un-strided padded plane directly.
    xp = jnp.pad(jnp.transpose(x, (0, 2, 3, 1)),
                 ((0, 0), (ph, ph), (pw, pw), (0, 0)))

    kernel = partial(_dw_bn_leaky_kernel, kh=kh, kw=kw, sh=sh,
                     leaky_slope=float(leaky_slope))

    out = pl.pallas_call(
        kernel,
        out_shape=jax.ShapeDtypeStruct((N, h_out, w1, c_out), x.dtype),
        grid=(N, c_out // tc, n_h),
        in_specs=[
            pl.BlockSpec((pl.Squeezed(), hp, wp, tc), lambda n, c, h: (n, 0, 0, c)),
            pl.BlockSpec((kh * kw, tc), lambda n, c, h: (0, c)),
            pl.BlockSpec((1, tc), lambda n, c, h: (0, c)),
        ],
        out_specs=pl.BlockSpec((pl.Squeezed(), th, w1, tc),
                               lambda n, c, h: (n, h, 0, c)),
        compiler_params=pltpu.CompilerParams(
            dimension_semantics=("parallel", "parallel", "parallel"),
            vmem_limit_bytes=vmem_limit,
        ),
    )(xp, w_taps, b_vec)

    if sw > 1:
        # TODO(synk): strided (sublane) output store inside the kernel would also
        # avoid writing the extra columns to HBM; the slice below fuses with the
        # transpose back to NCHW, so no extra HBM pass is added.
        out = out[:, :, ::sw, :]
    return jnp.transpose(out, (0, 3, 1, 2))


class Conv2dDWBatchLeaky:
    """JAX/Pallas mirror of the PyTorch Conv2dDWBatchLeaky forward (inference)."""

    def __init__(self, in_channels, out_channels, kernel_size, stride,
                 leaky_slope=0.1, eps=1e-5, key=None):
        self.in_channels = in_channels
        self.out_channels = out_channels
        self.kernel_size = kernel_size
        self.stride = stride
        self.leaky_slope = leaky_slope
        self.eps = eps
        kh, kw = _pair(kernel_size)
        if key is None:
            key = jax.random.PRNGKey(0)
        # depthwise conv weight (out_channels, 1, kh, kw), no conv bias
        self.conv_weight = 0.1 * jax.random.normal(key, (out_channels, 1, kh, kw),
                                                   jnp.float32)
        # BatchNorm2d affine params / running stats (eval mode)
        self.bn_gamma = jnp.ones((out_channels,), jnp.float32)
        self.bn_beta = jnp.zeros((out_channels,), jnp.float32)
        self.bn_mean = jnp.zeros((out_channels,), jnp.float32)
        self.bn_var = jnp.ones((out_channels,), jnp.float32)

    def __call__(self, x):
        return conv2d_dw_batch_leaky(
            x, self.conv_weight, self.bn_gamma, self.bn_beta,
            self.bn_mean, self.bn_var,
            kernel_size=self.kernel_size, stride=self.stride,
            leaky_slope=self.leaky_slope, eps=self.eps)


# --------------------------------- demo ---------------------------------------

if __name__ == "__main__":
    key = jax.random.PRNGKey(0)
    kx, kw_, kg, kb, km, kv = jax.random.split(key, 6)

    def make_module(c_in, c_out, k, s):
        mod = Conv2dDWBatchLeaky(c_in, c_out, k, s, leaky_slope=0.1)
        mod.conv_weight = 0.3 * jax.random.normal(kw_, (c_out, 1, k, k), jnp.float32)
        mod.bn_gamma = 1.0 + 0.2 * jax.random.normal(kg, (c_out,), jnp.float32)
        mod.bn_beta = 0.1 * jax.random.normal(kb, (c_out,), jnp.float32)
        mod.bn_mean = 0.05 * jax.random.normal(km, (c_out,), jnp.float32)
        mod.bn_var = 0.5 + jnp.abs(jax.random.normal(kv, (c_out,), jnp.float32))
        return mod

    def check(name, mod, x, atol, rtol):
        y = jax.block_until_ready(mod(x))
        y_ref = _reference_forward(x, mod.conv_weight, mod.bn_gamma, mod.bn_beta,
                                   mod.bn_mean, mod.bn_var,
                                   kernel_size=mod.kernel_size, stride=mod.stride,
                                   leaky_slope=mod.leaky_slope, eps=mod.eps)
        assert y.shape == y_ref.shape, (name, y.shape, y_ref.shape)
        yf = y.astype(jnp.float32)
        rf = y_ref.astype(jnp.float32)
        err = float(jnp.max(jnp.abs(yf - rf)))
        assert jnp.allclose(yf, rf, atol=atol, rtol=rtol), (name, err)

    N, C, H, W = 2, 4, 16, 16
    x32 = jax.random.normal(kx, (N, C, H, W), jnp.float32)

    check("k3_s1_f32", make_module(C, C, 3, 1), x32, 1e-4, 1e-4)
    check("k3_s2_f32", make_module(C, C, 3, 2), x32, 1e-4, 1e-4)
    check("k3_s1_mult2", make_module(C, 2 * C, 3, 1), x32, 1e-4, 1e-4)
    check("k3_s1_bf16", make_module(C, C, 3, 1), x32.astype(jnp.bfloat16), 3e-2, 3e-2)

    print("KERNEL_OK")
</pallas_src>

<mosaic_0001>
module attributes {stable_mosaic.version = 11 : i64} {
  func.func @_dw_bn_leaky_kernel(%arg0: i32, %arg1: i32, %arg2: i32, %arg3: memref<1x18x18x4xf32, #tpu.memory_space<vmem>>, %arg4: memref<9x4xf32, #tpu.memory_space<vmem>>, %arg5: memref<1x4xf32, #tpu.memory_space<vmem>>, %arg6: memref<1x4x16x4xf32, #tpu.memory_space<vmem>>) attributes {dimension_semantics = [#tpu.dimension_semantics<parallel>, #tpu.dimension_semantics<parallel>, #tpu.dimension_semantics<parallel>], iteration_bounds = array<i64: 2, 1, 4>, scalar_prefetch = 0 : i64, scratch_operands = 0 : i64, tpu.core_type = #tpu.core_type<tc>, window_params = [{transform_indices = @transform_0, window_bounds = array<i64: 1, 18, 18, 4>}, {transform_indices = @transform_1, window_bounds = array<i64: 9, 4>}, {transform_indices = @transform_2, window_bounds = array<i64: 1, 4>}, {transform_indices = @transform_3, window_bounds = array<i64: 1, 4, 16, 4>}]} {
    %c4_i32 = arith.constant 4 : i32
    %0 = arith.muli %arg2, %c4_i32 : i32
    %c0 = arith.constant 0 : index
    %c0_0 = arith.constant 0 : index
    %1 = vector.load %arg4[%c0, %c0_0] : memref<9x4xf32, #tpu.memory_space<vmem>>, vector<9x4xf32>
    %c0_1 = arith.constant 0 : index
    %c0_2 = arith.constant 0 : index
    %2 = vector.load %arg5[%c0_1, %c0_2] : memref<1x4xf32, #tpu.memory_space<vmem>>, vector<1x4xf32>
    %3 = vector.shape_cast %2 : vector<1x4xf32> to vector<4xf32>
    %4 = vector.shape_cast %3 : vector<4xf32> to vector<1x1x4xf32>
    %5 = vector.shape_cast %4 : vector<1x1x4xf32> to vector<1x1x4xf32>
    %6 = vector.broadcast %5 : vector<1x1x4xf32> to vector<4x16x4xf32>
    %c0_i32 = arith.constant 0 : i32
    %7 = arith.addi %0, %c0_i32 : i32
    %c0_3 = arith.constant 0 : index
    %8 = arith.index_cast %7 : i32 to index
    %c0_4 = arith.constant 0 : index
    %c0_5 = arith.constant 0 : index
    %9 = vector.load %arg3[%c0_3, %8, %c0_4, %c0_5] : memref<1x18x18x4xf32, #tpu.memory_space<vmem>>, vector<1x4x16x4xf32>
    %10 = vector.shape_cast %9 : vector<1x4x16x4xf32> to vector<4x16x4xf32>
    %11 = vector.extract_strided_slice %1 {offsets = [0, 0], sizes = [1, 4], strides = [1, 1]} : vector<9x4xf32> to vector<1x4xf32>
    %12 = vector.shape_cast %11 : vector<1x4xf32> to vector<4xf32>
    %13 = vector.shape_cast %12 : vector<4xf32> to vector<1x1x4xf32>
    %14 = vector.broadcast %13 : vector<1x1x4xf32> to vector<4x16x4xf32>
    %15 = arith.mulf %10, %14 : vector<4x16x4xf32>
    %16 = arith.addf %6, %15 : vector<4x16x4xf32>
    %c0_i32_6 = arith.constant 0 : i32
    %17 = arith.addi %0, %c0_i32_6 : i32
    %c0_7 = arith.constant 0 : index
    %18 = arith.index_cast %17 : i32 to index
    %c1 = arith.constant 1 : index
    %c0_8 = arith.constant 0 : index
    %19 = vector.load %arg3[%c0_7, %18, %c1, %c0_8] : memref<1x18x18x4xf32, #tpu.memory_space<vmem>>, vector<1x4x16x4xf32>
    %20 = vector.shape_cast %19 : vector<1x4x16x4xf32> to vector<4x16x4xf32>
    %21 = vector.extract_strided_slice %1 {offsets = [1, 0], sizes = [1, 4], strides = [1, 1]} : vector<9x4xf32> to vector<1x4xf32>
    %22 = vector.shape_cast %21 : vector<1x4xf32> to vector<4xf32>
    %23 = vector.shape_cast %22 : vector<4xf32> to vector<1x1x4xf32>
    %24 = vector.broadcast %23 : vector<1x1x4xf32> to vector<4x16x4xf32>
    %25 = arith.mulf %20, %24 : vector<4x16x4xf32>
    %26 = arith.addf %16, %25 : vector<4x16x4xf32>
    %c0_i32_9 = arith.constant 0 : i32
    %27 = arith.addi %0, %c0_i32_9 : i32
    %c0_10 = arith.constant 0 : index
    %28 = arith.index_cast %27 : i32 to index
    %c2 = arith.constant 2 : index
    %c0_11 = arith.constant 0 : index
    %29 = vector.load %arg3[%c0_10, %28, %c2, %c0_11] : memref<1x18x18x4xf32, #tpu.memory_space<vmem>>, vector<1x4x16x4xf32>
    %30 = vector.shape_cast %29 : vector<1x4x16x4xf32> to vector<4x16x4xf32>
    %31 = vector.extract_strided_slice %1 {offsets = [2, 0], sizes = [1, 4], strides = [1, 1]} : vector<9x4xf32> to vector<1x4xf32>
    %32 = vector.shape_cast %31 : vector<1x4xf32> to vector<4xf32>
    %33 = vector.shape_cast %32 : vector<4xf32> to vector<1x1x4xf32>
    %34 = vector.broadcast %33 : vector<1x1x4xf32> to vector<4x16x4xf32>
    %35 = arith.mulf %30, %34 : vector<4x16x4xf32>
    %36 = arith.addf %26, %35 : vector<4x16x4xf32>
    %c1_i32 = arith.constant 1 : i32
    %37 = arith.addi %0, %c1_i32 : i32
    %c0_12 = arith.constant 0 : index
    %38 = arith.index_cast %37 : i32 to index
    %c0_13 = arith.constant 0 : index
    %c0_14 = arith.constant 0 : index
    %39 = vector.load %arg3[%c0_12, %38, %c0_13, %c0_14] : memref<1x18x18x4xf32, #tpu.memory_space<vmem>>, vector<1x4x16x4xf32>
    %40 = vector.shape_cast %39 : vector<1x4x16x4xf32> to vector<4x16x4xf32>
    %41 = vector.extract_strided_slice %1 {offsets = [3, 0], sizes = [1, 4], strides = [1, 1]} : vector<9x4xf32> to vector<1x4xf32>
    %42 = vector.shape_cast %41 : vector<1x4xf32> to vector<4xf32>
    %43 = vector.shape_cast %42 : vector<4xf32> to vector<1x1x4xf32>
    %44 = vector.broadcast %43 : vector<1x1x4xf32> to vector<4x16x4xf32>
    %45 = arith.mulf %40, %44 : vector<4x16x4xf32>
    %46 = arith.addf %36, %45 : vector<4x16x4xf32>
    %c1_i32_15 = arith.constant 1 : i32
    %47 = arith.addi %0, %c1_i32_15 : i32
    %c0_16 = arith.constant 0 : index
    %48 = arith.index_cast %47 : i32 to index
    %c1_17 = arith.constant 1 : index
    %c0_18 = arith.constant 0 : index
    %49 = vector.load %arg3[%c0_16, %48, %c1_17, %c0_18] : memref<1x18x18x4xf32, #tpu.memory_space<vmem>>, vector<1x4x16x4xf32>
    %50 = vector.shape_cast %49 : vector<1x4x16x4xf32> to vector<4x16x4xf32>
    %51 = vector.extract_strided_slice %1 {offsets = [4, 0], sizes = [1, 4], strides = [1, 1]} : vector<9x4xf32> to vector<1x4xf32>
    %52 = vector.shape_cast %51 : vector<1x4xf32> to vector<4xf32>
    %53 = vector.shape_cast %52 : vector<4xf32> to vector<1x1x4xf32>
    %54 = vector.broadcast %53 : vector<1x1x4xf32> to vector<4x16x4xf32>
    %55 = arith.mulf %50, %54 : vector<4x16x4xf32>
    %56 = arith.addf %46, %55 : vector<4x16x4xf32>
    %c1_i32_19 = arith.constant 1 : i32
    %57 = arith.addi %0, %c1_i32_19 : i32
    %c0_20 = arith.constant 0 : index
    %58 = arith.index_cast %57 : i32 to index
    %c2_21 = arith.constant 2 : index
    %c0_22 = arith.constant 0 : index
    %59 = vector.load %arg3[%c0_20, %58, %c2_21, %c0_22] : memref<1x18x18x4xf32, #tpu.memory_space<vmem>>, vector<1x4x16x4xf32>
    %60 = vector.shape_cast %59 : vector<1x4x16x4xf32> to vector<4x16x4xf32>
    %61 = vector.extract_strided_slice %1 {offsets = [5, 0], sizes = [1, 4], strides = [1, 1]} : vector<9x4xf32> to vector<1x4xf32>
    %62 = vector.shape_cast %61 : vector<1x4xf32> to vector<4xf32>
    %63 = vector.shape_cast %62 : vector<4xf32> to vector<1x1x4xf32>
    %64 = vector.broadcast %63 : vector<1x1x4xf32> to vector<4x16x4xf32>
    %65 = arith.mulf %60, %64 : vector<4x16x4xf32>
    %66 = arith.addf %56, %65 : vector<4x16x4xf32>
    %c2_i32 = arith.constant 2 : i32
    %67 = arith.addi %0, %c2_i32 : i32
    %c0_23 = arith.constant 0 : index
    %68 = arith.index_cast %67 : i32 to index
    %c0_24 = arith.constant 0 : index
    %c0_25 = arith.constant 0 : index
    %69 = vector.load %arg3[%c0_23, %68, %c0_24, %c0_25] : memref<1x18x18x4xf32, #tpu.memory_space<vmem>>, vector<1x4x16x4xf32>
    %70 = vector.shape_cast %69 : vector<1x4x16x4xf32> to vector<4x16x4xf32>
    %71 = vector.extract_strided_slice %1 {offsets = [6, 0], sizes = [1, 4], strides = [1, 1]} : vector<9x4xf32> to vector<1x4xf32>
    %72 = vector.shape_cast %71 : vector<1x4xf32> to vector<4xf32>
    %73 = vector.shape_cast %72 : vector<4xf32> to vector<1x1x4xf32>
    %74 = vector.broadcast %73 : vector<1x1x4xf32> to vector<4x16x4xf32>
    %75 = arith.mulf %70, %74 : vector<4x16x4xf32>
    %76 = arith.addf %66, %75 : vector<4x16x4xf32>
    %c2_i32_26 = arith.constant 2 : i32
    %77 = arith.addi %0, %c2_i32_26 : i32
    %c0_27 = arith.constant 0 : index
    %78 = arith.index_cast %77 : i32 to index
    %c1_28 = arith.constant 1 : index
    %c0_29 = arith.constant 0 : index
    %79 = vector.load %arg3[%c0_27, %78, %c1_28, %c0_29] : memref<1x18x18x4xf32, #tpu.memory_space<vmem>>, vector<1x4x16x4xf32>
    %80 = vector.shape_cast %79 : vector<1x4x16x4xf32> to vector<4x16x4xf32>
    %81 = vector.extract_strided_slice %1 {offsets = [7, 0], sizes = [1, 4], strides = [1, 1]} : vector<9x4xf32> to vector<1x4xf32>
    %82 = vector.shape_cast %81 : vector<1x4xf32> to vector<4xf32>
    %83 = vector.shape_cast %82 : vector<4xf32> to vector<1x1x4xf32>
    %84 = vector.broadcast %83 : vector<1x1x4xf32> to vector<4x16x4xf32>
    %85 = arith.mulf %80, %84 : vector<4x16x4xf32>
    %86 = arith.addf %76, %85 : vector<4x16x4xf32>
    %c2_i32_30 = arith.constant 2 : i32
    %87 = arith.addi %0, %c2_i32_30 : i32
    %c0_31 = arith.constant 0 : index
    %88 = arith.index_cast %87 : i32 to index
    %c2_32 = arith.constant 2 : index
    %c0_33 = arith.constant 0 : index
    %89 = vector.load %arg3[%c0_31, %88, %c2_32, %c0_33] : memref<1x18x18x4xf32, #tpu.memory_space<vmem>>, vector<1x4x16x4xf32>
    %90 = vector.shape_cast %89 : vector<1x4x16x4xf32> to vector<4x16x4xf32>
    %91 = vector.extract_strided_slice %1 {offsets = [8, 0], sizes = [1, 4], strides = [1, 1]} : vector<9x4xf32> to vector<1x4xf32>
    %92 = vector.shape_cast %91 : vector<1x4xf32> to vector<4xf32>
    %93 = vector.shape_cast %92 : vector<4xf32> to vector<1x1x4xf32>
    %94 = vector.broadcast %93 : vector<1x1x4xf32> to vector<4x16x4xf32>
    %95 = arith.mulf %90, %94 : vector<4x16x4xf32>
    %96 = arith.addf %86, %95 : vector<4x16x4xf32>
    %cst = arith.constant 0.000000e+00 : f32
    %97 = vector.broadcast %cst : f32 to vector<4x16x4xf32>
    %98 = arith.cmpf oge, %96, %97 : vector<4x16x4xf32>
    %cst_34 = arith.constant 1.000000e-01 : f32
    %99 = vector.broadcast %cst_34 : f32 to vector<4x16x4xf32>
    %100 = arith.mulf %96, %99 : vector<4x16x4xf32>
    %101 = arith.select %98, %96, %100 : vector<4x16x4xi1>, vector<4x16x4xf32>
    %c0_35 = arith.constant 0 : index
    %c0_36 = arith.constant 0 : index
    %c0_37 = arith.constant 0 : index
    %c0_38 = arith.constant 0 : index
    %102 = vector.load %arg6[%c0_35, %c0_36, %c0_37, %c0_38] : memref<1x4x16x4xf32, #tpu.memory_space<vmem>>, vector<1x4x16x4xf32>
    %103 = vector.shape_cast %102 : vector<1x4x16x4xf32> to vector<4x16x4xf32>
    %104 = vector.shape_cast %101 : vector<4x16x4xf32> to vector<1x4x16x4xf32>
    tpu.vector_store %arg6[%c0_35, %c0_36, %c0_37, %c0_38], %104 {strides = array<i32>} : memref<1x4x16x4xf32, #tpu.memory_space<vmem>>, vector<1x4x16x4xf32>,
    return
  }
  func.func @transform_0(%arg0: i32, %arg1: i32, %arg2: i32) -> (i32, i32, i32, i32) {
    %c0_i32 = arith.constant 0 : i32
    %c0_i32_0 = arith.constant 0 : i32
    %c0_i32_1 = arith.constant 0 : i32
    return %arg0, %c0_i32, %c0_i32_0, %arg1 : i32, i32, i32, i32
  }
  func.func @transform_1(%arg0: i32, %arg1: i32, %arg2: i32) -> (i32, i32) {
    %c0_i32 = arith.constant 0 : i32
    %c0_i32_0 = arith.constant 0 : i32
    return %c0_i32, %arg1 : i32, i32
  }
  func.func @transform_2(%arg0: i32, %arg1: i32, %arg2: i32) -> (i32, i32) {
    %c0_i32 = arith.constant 0 : i32
    %c0_i32_0 = arith.constant 0 : i32
    return %c0_i32, %arg1 : i32, i32
  }
  func.func @transform_3(%arg0: i32, %arg1: i32, %arg2: i32) -> (i32, i32, i32, i32) {
    %c0_i32 = arith.constant 0 : i32
    %c0_i32_0 = arith.constant 0 : i32
    return %arg0, %arg2, %c0_i32, %arg1 : i32, i32, i32, i32
  }
}

</mosaic_0001>

<bundles_post_ra>
// kernel: conv2d_dw_batch_leaky.1
= control target key start
LH: loop header
LB: loop body
LE: loop exit
PB: predicated region body
PF: predicated region fallthrough
CT: control target
= control target key end

     0   :  { %s843_s12 = smov 0   ;;  %s845_s13 = smov 0   ;;  %s1155_s0 = inlined_call_operand.vmem [shape: f32[2,18,18,4], index: 0, kind: input, shape index: {}]   ;;  %s1156_s1 = inlined_call_operand.vmem [shape: f32[9,4], index: 1, kind: input, shape index: {}]   ;;  %s1157_s2 = inlined_call_operand.vmem [shape: f32[1,4], index: 2, kind: input, shape index: {}]   ;;  %s1158_s3 = inlined_call_operand.vmem [shape: f32[2,16,16,4], index: 3, kind: output, shape index: {}]  }
   0x1   :  { %s847_s14 = smov 0   ;;  %s849_s15 = smov 0  }
   0x2   :  { %s851_s16 = smov 0  }
   0x3 LB: > { %s25_s17 = sadd.s32 1, %s813_s14  ;;  %s32_s18 = sadd.s32 1, %s817_s15  ;;  %s821_s16 = sphi %s851_s16, %s13_s16   ;;  %s817_s15 = sphi %s849_s15, %s1163_s15   ;;  %s813_s14 = sphi %s847_s14, %s1162_s14   ;;  %s809_s13 = sphi %s845_s13, %s1161_s13   ;;  %s805_s12 = sphi %s843_s12, %s1160_s12  }
   0x4   : > { %p26_p0 = scmp.ge.s32.totalorder %s25_s17, 4  ;;  %p678_p1 = scmp.ge.s32.totalorder %s821_s16, 1 }
   0x5   : > { %p182_p2 = scmp.lt.s32.totalorder %s821_s16, 9 }
   0x6   : > { %s1165_s17 = smov (%p26_p0, %s25_s17), 0  ;;  %s1167_s18 = smov (!%p26_p0, %s32_s18), %s817_s15 }
   0x7   : > { %p183_p3 = pnand %p678_p1, %p182_p2  ;;  %p34_p4 = scmp.ge.s32.totalorder %s1167_s18, 2 }
   0x8   : > { %p224_p5 = scmp.lt.s32.totalorder (!%p183_p3), %s809_s13, 1  ;;  %s685_s21 = smul.u32 (!%p183_p3), 96, %s805_s12 }
   0x9   : > { %s1169_s18 = smov (%p34_p4, %s1167_s18), 0  ;;  %186 = sbr.rel (%p183_p3) target bundleno = 74 (0x4a), region = 32 }
   0xa   : > { %s680_s4 = sshll.u32 (!%p183_p3), %s805_s12, 2 }
   0xb   : > { %p946_p6 = scmp.lt.s32.totalorder (!%p183_p3), %s680_s4, 15 }
   0xe   : > { %s1171_s13 = smov (!%p224_p5, %s809_s13), 1  ;;  %v254_v0 = vld [vmem:[%s1156_s1] sm:$0xff]  ;;  %v909_v9 = vld [vmem:[%s1156_s1 + $0x8] ss:$0 sm:$0xff]  ;;  %s1173_s4 = smov (!%p946_p6, %s680_s4), 15  ;;  %vm517_vm0 = vcmask 31744  }
   0xf   : > { %s740_s22 = smul.u32 432, %s1171_s13  ;;  %v882_v1 = vperm.slane %v254_v0, 0  ;;  %v884_v2 = vperm.slane %v254_v0, 1  ;;  %v892_v3 = vld [vmem:[%s1157_s2] ss:$0 sm:$0xff]  ;;  %v894_v4 = vperm.slane %v254_v0, 2 }
  0x10   : > { %v896_v5 = vperm.slane %v254_v0, 3  ;;  %v900_v6 = vperm.slane %v254_v0, 4  ;;  %v902_v7 = vperm.slane %v254_v0, 5  ;;  %v904_v8 = vperm.slane %v254_v0, 6  ;;  %s681_s6 = sshll.u32 %s1173_s4, 1  ;;  %s682_s7 = sshll.u32 %s1171_s13, 5 }
  0x11   : > { %s231_s25 = scalar_lea.vmem %s1155_s0, %s740_s22  ;;  %v914_v13 = vperm.slane %v254_v0, 7  ;;  %s249_s8 = sadd.s32 %s682_s7, %s681_s6 }
  0x12   : > { %s898_s28 = scalar_lea.vmem %s231_s25, %s685_s21  ;;  %s683_s9 = sshll.u32 %s249_s8, 3 }
  0x13   : > { %v262_v10 = vld [vmem:[%s898_s28] sm:$0xff]  ;;  %v688_v16 = vld [vmem:[%s898_s28 + $0x18] sm:$0xff]  ;;  %v925_v21 = vld [vmem:[%s898_s28 + $0x30] sm:$0xff]  ;;  %s1070_s12 = scalar_lea.vmem %s1158_s3, %s683_s9 }
  0x14   : > { %v287_v11 = vld [vmem:[%s898_s28 + $0x1] sm:$0xff]  ;;  %v271_v14 = vmul.f32 %v882_v1, %v262_v10  ;;  %v696_v17 = vld [vmem:[%s898_s28 + $0x19] sm:$0xff]  ;;  %v349_v20 = vmul.f32 %v688_v16, %v896_v5  ;;  %v928_v22 = vld [vmem:[%s898_s28 + $0x31] sm:$0xff]  ;;  %v273_v24 = vmul.f32 %v688_v16, %v882_v1  ;;  %v939_v28 = vmul.f32 %v925_v21, %v904_v8 }
  0x15   : > { %v312_v12 = vld [vmem:[%s898_s28 + $0x2] sm:$0xff]  ;;  %v296_v15 = vmul.f32 %v884_v2, %v287_v11  ;;  %v704_v18 = vld [vmem:[%s898_s28 + $0x1a] sm:$0xff]  ;;  %v931_v23 = vld [vmem:[%s898_s28 + $0x32] sm:$0xff]  ;;  %v374_v26 = vmul.f32 %v696_v17, %v900_v6  ;;  %v952_v32 = vmul.f32 %v928_v22, %v914_v13  ;;  %v298_v52 = vmul.f32 %v696_v17, %v884_v2 }
  0x16   : > { %v321_v19 = vmul.f32 %v894_v4, %v312_v12  ;;  %v279_v25 = vadd.f32 %v892_v3, %v271_v14  ;;  %v399_v27 = vmul.f32 %v704_v18, %v902_v7  ;;  %v263_v29 = vld [vmem:[%s898_s28 + $0x8] sm:$0xff]  ;;  %v956_v33 = vmul.f32 %v909_v9, %v931_v23  ;;  %v689_v36 = vld [vmem:[%s898_s28 + $0x20] sm:$0xff]  ;;  %v966_v42 = vld [vmem:[%s898_s28 + $0x38] sm:$0xff] }
  0x17   : > { %v288_v30 = vld [vmem:[%s898_s28 + $0x9] sm:$0xff]  ;;  %v272_v34 = vmul.f32 %v882_v1, %v263_v29  ;;  %v350_v39 = vmul.f32 %v689_v36, %v896_v5  ;;  %v697_v40 = vld [vmem:[%s898_s28 + $0x21] sm:$0xff]  ;;  %v281_v43 = vadd.f32 %v892_v3, %v273_v24  ;;  %v428_v47 = vmul.f32 %v966_v42, %v904_v8  ;;  %v975_v48 = vld [vmem:[%s898_s28 + $0x39] sm:$0xff] }
  0x18   : > { %v313_v31 = vld [vmem:[%s898_s28 + $0xa] sm:$0xff]  ;;  %v297_v35 = vmul.f32 %v884_v2, %v288_v30  ;;  %v304_v37 = vadd.f32 %v296_v15, %v279_v25  ;;  %v705_v41 = vld [vmem:[%s898_s28 + $0x22] sm:$0xff]  ;;  %v375_v45 = vmul.f32 %v697_v40, %v900_v6  ;;  %v979_v50 = vmul.f32 %v975_v48, %v914_v13  ;;  %v982_v51 = vld [vmem:[%s898_s28 + $0x3a] sm:$0xff] }
  0x19   : > { %v322_v38 = vmul.f32 %v894_v4, %v313_v31  ;;  %v280_v44 = vadd.f32 %v892_v3, %v272_v34  ;;  %v400_v46 = vmul.f32 %v705_v41, %v902_v7  ;;  %v323_v53 = vmul.f32 %v704_v18, %v894_v4  ;;  %v1001_v58 = vld [vmem:[%s898_s28 + $0x48] sm:$0xff] }
  0x1a   : > { %v329_v49 = vadd.f32 %v321_v19, %v304_v37  ;;  %v994_v55 = vmul.f32 %v909_v9, %v982_v51  ;;  %v351_v56 = vmul.f32 %v925_v21, %v896_v5  ;;  %v376_v57 = vmul.f32 %v928_v22, %v900_v6  ;;  %v1008_v63 = vld [vmem:[%s898_s28 + $0x49] sm:$0xff]  ;;  %v1035_v37 = vld [vmem:[%s898_s28 + $0x51] sm:$0xff] }
  0x1b   : > { %v305_v54 = vadd.f32 %v297_v35, %v280_v44  ;;  %v306_v60 = vadd.f32 %v298_v52, %v281_v43  ;;  %v401_v61 = vmul.f32 %v931_v23, %v902_v7  ;;  %v429_v62 = vmul.f32 %v1001_v58, %v904_v8  ;;  %v1013_v11 = vld [vmem:[%s898_s28 + $0x4a] sm:$0xff] }
  0x1c   : > { %v357_v59 = vadd.f32 %v349_v20, %v329_v49  ;;  %v454_v10 = vmul.f32 %v1008_v63, %v914_v13  ;;  %v274_v12 = vmul.f32 %v689_v36, %v882_v1  ;;  %v299_v14 = vmul.f32 %v697_v40, %v884_v2 }
  0x1d   : > { %v330_v0 = vadd.f32 %v322_v38, %v305_v54  ;;  %v331_v16 = vadd.f32 %v323_v53, %v306_v60  ;;  %v479_v17 = vmul.f32 %v909_v9, %v1013_v11  ;;  %v324_v18 = vmul.f32 %v705_v41, %v894_v4  ;;  %v1038_v38 = vld [vmem:[%s898_s28 + $0x52] sm:$0xff]  ;;  %v718_v60 = vld [vmem:[%s898_s28 + $0x60] sm:$0xff] }
  0x1e   : > { %v382_v15 = vadd.f32 %v374_v26, %v357_v59  ;;  %v282_v20 = vadd.f32 %v892_v3, %v274_v12  ;;  %v352_v24 = vmul.f32 %v966_v42, %v896_v5  ;;  %v377_v25 = vmul.f32 %v975_v48, %v900_v6  ;;  %v1028_v26 = vld [vmem:[%s898_s28 + $0x50] sm:$0xff] }
  0x1f   : > { %v358_v19 = vadd.f32 %v350_v39, %v330_v0  ;;  %v359_v30 = vadd.f32 %v351_v56, %v331_v16  ;;  %v402_v31 = vmul.f32 %v982_v51, %v902_v7  ;;  %v430_v34 = vmul.f32 %v1028_v26, %v904_v8 }
  0x20   : > { %v407_v29 = vadd.f32 %v399_v27, %v382_v15  ;;  %v307_v36 = vadd.f32 %v299_v14, %v282_v20  ;;  %v275_v39 = vmul.f32 %v925_v21, %v882_v1  ;;  %v300_v27 = vmul.f32 %v928_v22, %v884_v2 }
  0x21   : > { %v383_v35 = vadd.f32 %v375_v45, %v358_v19  ;;  %v384_v41 = vadd.f32 %v376_v57, %v359_v30  ;;  %v455_v43 = vmul.f32 %v1035_v37, %v914_v13  ;;  %v480_v44 = vmul.f32 %v909_v9, %v1038_v38 }
  0x22   : > { %v435_v40 = vadd.f32 %v939_v28, %v407_v29  ;;  %v332_v49 = vadd.f32 %v324_v18, %v307_v36  ;;  %v283_v52 = vadd.f32 %v892_v3, %v275_v39  ;;  %v325_v21 = vmul.f32 %v931_v23, %v894_v4 }
  0x23   : > { %v408_v45 = vadd.f32 %v400_v46, %v383_v35  ;;  %v409_v53 = vadd.f32 %v401_v61, %v384_v41  ;;  %v353_v28 = vmul.f32 %v1001_v58, %v896_v5  ;;  %v378_v54 = vmul.f32 %v1008_v63, %v900_v6  ;;  %v734_v41 = vld [vmem:[%s898_s28 + $0x62] sm:$0xff] }
  0x24   : > { %v460_v22 = vadd.f32 %v952_v32, %v435_v40  ;;  %v360_v57 = vadd.f32 %v352_v24, %v332_v49  ;;  %v308_v59 = vadd.f32 %v300_v27, %v283_v52  ;;  %v403_v46 = vmul.f32 %v1013_v11, %v902_v7 }
  0x25   : > { %v436_v56 = vadd.f32 %v428_v47, %v408_v45  ;;  %v437_v23 = vadd.f32 %v429_v62, %v409_v53  ;;  %v431_v32 = vmul.f32 %v718_v60, %v904_v8  ;;  %v276_v61 = vmul.f32 %v966_v42, %v882_v1 }
  0x26   : > { %v485_v0 = vadd.f32 %v956_v33, %v460_v22  ;;  %v385_v14 = vadd.f32 %v377_v25, %v360_v57  ;;  %v333_v15 = vadd.f32 %v325_v21, %v308_v59  ;;  %v301_v47 = vmul.f32 %v975_v48, %v884_v2  ;;  %v727_v59 = vld [vmem:[%s898_s28 + $0x69] sm:$0xff] }
  0x27   : > { %v461_v12 = vadd.f32 %v979_v50, %v436_v56  ;;  %v462_v62 = vadd.f32 %v454_v10, %v437_v23  ;;  %v284_v16 = vadd.f32 %v892_v3, %v276_v61  ;;  %v326_v19 = vmul.f32 %v982_v51, %v894_v4  ;;  %v735_v61 = vld [vmem:[%s898_s28 + $0x6a] sm:$0xff] }
  0x28   : > { %vm493_vm1 = vcmp.ge.f32.partialorder %v485_v0, 0.0  ;;  %v501_v33 = vmul.f32 0.1, %v485_v0  ;;  %v410_v50 = vadd.f32 %v402_v31, %v385_v14  ;;  %v361_v18 = vadd.f32 %v353_v28, %v333_v15  ;;  %v726_v31 = vld [vmem:[%s898_s28 + $0x61] sm:$0xff] }
  0x29   : > { %v486_v42 = vadd.f32 %v994_v55, %v461_v12  ;;  %v487_v20 = vadd.f32 %v479_v17, %v462_v62  ;;  %v309_v24 = vadd.f32 %v301_v47, %v284_v16  ;;  %v354_v25 = vmul.f32 %v1028_v26, %v896_v5 }
  0x2a   : > { %v509_v48 = vsel %vm493_vm1, %v485_v0, %v501_v33  ;;  %v438_v29 = vadd.f32 %v430_v34, %v410_v50  ;;  %v386_v55 = vadd.f32 %v378_v54, %v361_v18  ;;  %v379_v17 = vmul.f32 %v1035_v37, %v900_v6 }
  0x2b   : > { %518 = vst.msk [vmem:[%s1070_s12] sm:$0xff] %vm517_vm0, %v509_v48  ;;  %vm494_vm2 = vcmp.ge.f32.partialorder %v486_v42, 0.0  ;;  %v502_v10 = vmul.f32 0.1, %v486_v42  ;;  %vm495_vm3 = vcmp.ge.f32.partialorder %v487_v20, 0.0  ;;  %v334_v51 = vadd.f32 %v326_v19, %v309_v24 }
  0x2c   : > { %v503_v30 = vmul.f32 0.1, %v487_v20  ;;  %v463_v36 = vadd.f32 %v455_v43, %v438_v29  ;;  %v411_v39 = vadd.f32 %v403_v46, %v386_v55  ;;  %v456_v27 = vmul.f32 %v726_v31, %v914_v13  ;;  %v719_v43 = vld [vmem:[%s898_s28 + $0x68] sm:$0xff] }
  0x2d   : > { %v510_v35 = vsel %vm494_vm2, %v486_v42, %v502_v10  ;;  %v362_v34 = vadd.f32 %v354_v25, %v334_v51  ;;  %v404_v45 = vmul.f32 %v1038_v38, %v902_v7  ;;  %v481_v21 = vmul.f32 %v909_v9, %v734_v41 }
  0x2e   : > { %519 = vst.msk [vmem:[%s1070_s12 + $0x8] sm:$0xff] %vm517_vm0, %v510_v35  ;;  %v511_v40 = vsel %vm495_vm3, %v487_v20, %v503_v30  ;;  %v488_v49 = vadd.f32 %v480_v44, %v463_v36  ;;  %v439_v52 = vadd.f32 %v431_v32, %v411_v39  ;;  %v277_v22 = vmul.f32 %v1001_v58, %v882_v1  ;;  %v721_v30 = vld [vmem:[%s898_s28 + $0x80] sm:$0xff] }
  0x2f   : > { %520 = vst.msk [vmem:[%s1070_s12 + $0x10] sm:$0xff] %vm517_vm0, %v511_v40  ;;  %v387_v53 = vadd.f32 %v379_v17, %v362_v34  ;;  %v432_v28 = vmul.f32 %v719_v43, %v904_v8  ;;  %v302_v54 = vmul.f32 %v1008_v63, %v884_v2  ;;  %v327_v56 = vmul.f32 %v1013_v11, %v894_v4  ;;  %v729_v36 = vld [vmem:[%s898_s28 + $0x81] sm:$0xff] }
  0x30   : > { %vm496_vm4 = vcmp.ge.f32.partialorder %v488_v49, 0.0  ;;  %v504_v44 = vmul.f32 0.1, %v488_v49  ;;  %v464_v57 = vadd.f32 %v456_v27, %v439_v52  ;;  %v285_v46 = vadd.f32 %v892_v3, %v277_v22 }
  0x31   : > { %v412_v0 = vadd.f32 %v404_v45, %v387_v53  ;;  %v457_v23 = vmul.f32 %v727_v59, %v914_v13  ;;  %v355_v14 = vmul.f32 %v718_v60, %v896_v5  ;;  %v482_v11 = vmul.f32 %v909_v9, %v735_v61  ;;  %v720_v60 = vld [vmem:[%s898_s28 + $0x78] sm:$0xff] }
  0x32   : > { %v512_v58 = vsel %vm496_vm4, %v488_v49, %v504_v44  ;;  %v489_v32 = vadd.f32 %v481_v21, %v464_v57  ;;  %v310_v12 = vadd.f32 %v302_v54, %v285_v46  ;;  %v278_v15 = vmul.f32 %v1028_v26, %v882_v1  ;;  %v728_v26 = vld [vmem:[%s898_s28 + $0x79] sm:$0xff] }
  0x33   : > { %521 = vst.msk [vmem:[%s1070_s12 + $0x18] sm:$0xff] %vm517_vm0, %v512_v58  ;;  %v440_v63 = vadd.f32 %v432_v28, %v412_v0  ;;  %v303_v47 = vmul.f32 %v1035_v37, %v884_v2  ;;  %v380_v16 = vmul.f32 %v726_v31, %v900_v6  ;;  %v328_v18 = vmul.f32 %v1038_v38, %v894_v4  ;;  %v736_v4 = vld [vmem:[%s898_s28 + $0x7a] sm:$0xff] }
  0x34   : > { %vm497_vm5 = vcmp.ge.f32.partialorder %v489_v32, 0.0  ;;  %v505_v33 = vmul.f32 0.1, %v489_v32  ;;  %v335_v62 = vadd.f32 %v327_v56, %v310_v12  ;;  %v286_v50 = vadd.f32 %v892_v3, %v278_v15 }
  0x35   : > { %v465_v42 = vadd.f32 %v457_v23, %v440_v63  ;;  %v405_v1 = vmul.f32 %v734_v41, %v902_v7  ;;  %v356_v20 = vmul.f32 %v719_v43, %v896_v5  ;;  %v433_v3 = vmul.f32 %v720_v60, %v904_v8 }
  0x36   : > { %v513_v19 = vsel %vm497_vm5, %v489_v32, %v505_v33  ;;  %v363_v48 = vadd.f32 %v355_v14, %v335_v62  ;;  %v311_v37 = vadd.f32 %v303_v47, %v286_v50  ;;  %v381_v10 = vmul.f32 %v727_v59, %v900_v6  ;;  %v737_v6 = vld [vmem:[%s898_s28 + $0x82] sm:$0xff] }
  0x37   : > { %522 = vst.msk [vmem:[%s1070_s12 + $0x20] sm:$0xff] %vm517_vm0, %v513_v19  ;;  %v490_v2 = vadd.f32 %v482_v11, %v465_v42  ;;  %v458_v55 = vmul.f32 %v728_v26, %v914_v13  ;;  %v406_v17 = vmul.f32 %v735_v61, %v902_v7  ;;  %v483_v35 = vmul.f32 %v909_v9, %v736_v4 }
  0x38   : > { %v388_v24 = vadd.f32 %v380_v16, %v363_v48  ;;  %v336_v38 = vadd.f32 %v328_v18, %v311_v37  ;;  %v434_v27 = vmul.f32 %v721_v30, %v904_v8  ;;  %v459_v34 = vmul.f32 %v729_v36, %v914_v13 }
  0x39   : > { %vm498_vm6 = vcmp.ge.f32.partialorder %v490_v2, 0.0  ;;  %v506_v25 = vmul.f32 0.1, %v490_v2  ;;  %v484_v7 = vmul.f32 %v909_v9, %v737_v6 }
  0x3a   : > { %v413_v29 = vadd.f32 %v405_v1, %v388_v24  ;;  %v364_v51 = vadd.f32 %v356_v20, %v336_v38 }
  0x3b   : > { %v514_v31 = vsel %vm498_vm6, %v490_v2, %v506_v25 }
  0x3c   : > { %523 = vst.msk [vmem:[%s1070_s12 + $0x28] sm:$0xff] %vm517_vm0, %v514_v31  ;;  %v441_v5 = vadd.f32 %v433_v3, %v413_v29  ;;  %v389_v39 = vadd.f32 %v381_v10, %v364_v51 }
  0x3e   : > { %v466_v40 = vadd.f32 %v458_v55, %v441_v5  ;;  %v414_v41 = vadd.f32 %v406_v17, %v389_v39 }
  0x40   : > { %v491_v45 = vadd.f32 %v483_v35, %v466_v40  ;;  %v442_v49 = vadd.f32 %v434_v27, %v414_v41 }
  0x42   : > { %vm499_vm7 = vcmp.ge.f32.partialorder %v491_v45, 0.0  ;;  %v507_v52 = vmul.f32 0.1, %v491_v45  ;;  %v467_v21 = vadd.f32 %v459_v34, %v442_v49 }
  0x44   : > { %v515_v43 = vsel %vm499_vm7, %v491_v45, %v507_v52  ;;  %v492_v22 = vadd.f32 %v484_v7, %v467_v21 }
  0x45   : > { %524 = vst.msk [vmem:[%s1070_s12 + $0x30] sm:$0xff] %vm517_vm0, %v515_v43 }
  0x46   : > { %vm500_vm8 = vcmp.ge.f32.partialorder %v492_v22, 0.0  ;;  %v508_v53 = vmul.f32 0.1, %v492_v22 }
  0x48   : > { %v516_v8 = vsel %vm500_vm8, %v492_v22, %v508_v53 }
  0x49   : > { %525 = vst.msk [vmem:[%s1070_s12 + $0x38] sm:$0xff] %vm517_vm0, %v516_v8 }
  0x4a PF: > { %s13_s16 = sadd.s32 1, %s821_s16   ;;  %s1160_s12 = smov %s813_s14 }
  0x4b   : > { %p10_p7 = scmp.ge.s32.totalorder %s13_s16, 10   ;;  %s1161_s13 = smov %s817_s15 }
  0x4c   : > { %s1162_s14 = smov %s1165_s17  ;;  %s1163_s15 = smov %s1169_s18 }
  0x4d   :  { %12 = sbr.rel (!%p10_p7) target bundleno = 3 (0x3), region = 71 }

</bundles_post_ra>
